<compile_context>
chip_gen: v7x
topology: tpu7x:2x2x1
jax: 0.10.0
libtpu: 0.0.40
codegen_flags: <defaults>
</compile_context>

<pallas_src>
import jax
import jax.numpy as jnp
from jax.experimental import pallas as pl
from jax.experimental.pallas import tpu as pltpu


def _hypernet3_kernel(x_ref, w1_ref, b1_ref, w2_ref, b2_ref, o_ref):
    # x_ref: (tm, D_in) bf16, w1_ref: (D_in, D_h) bf16, b1_ref: (1, D_h) f32,
    # w2_ref: (D_h, D_out_p) bf16, b2_ref: (1, D_out_p) f32,
    # o_ref: (tm, D_out_p) in the caller dtype.
    h = jnp.dot(x_ref[...], w1_ref[...], preferred_element_type=jnp.float32)
    h = jnp.maximum(h + b1_ref[...], 0.0)            # nonlinearity #1 (f32)
    y = jnp.dot(h.astype(w2_ref.dtype), w2_ref[...],
                preferred_element_type=jnp.float32)
    y = jnp.maximum(y + b2_ref[...], 0.0)            # nonlinearity #2 (f32)
    o_ref[...] = y.astype(o_ref.dtype)


def _round_up(x, m):
    return ((x + m - 1) // m) * m


def _resident_spec(shape, buffered):
    # Constant index_map: the block stays VMEM-resident across the whole grid.
    if buffered is None:
        return pl.BlockSpec(shape, lambda i: (0, 0))
    return pl.BlockSpec(shape, lambda i: (0, 0), pipeline_mode=buffered)


def hypernet3_forward(x, w1, b1, w2, b2, main_input_dim, main_output_dim,
                      row_tile=512):
    """x: (B, S1, S2, D_in); w1: (D_in, D_h); b1: (D_h,);
    w2: (D_h, D_out); b2: (D_out,) with D_out == main_input_dim*main_output_dim."""
    B, S1, S2, D_in = x.shape
    D_h = w1.shape[1]
    D_out = w2.shape[1]
    assert D_out == main_input_dim * main_output_dim

    out_dtype = x.dtype
    M = B * S1 * S2
    x2d = x.reshape(M, D_in)

    LANE = 128
    SUB = 16  # row-tile multiple: safe sublane packing for both f32 and bf16

    # Lane-dense output padding only pays off once D_out >= 128; below that,
    # masked vst stores are cheaper than the extra writeback bytes.
    d_out_p = _round_up(D_out, LANE) if D_out >= LANE else D_out

    # Cap the row tile so the grid has at least two steps (megacore sharding
    # on v7x); use a single full-extent block when M is tiny.
    tm = min(row_tile, _round_up(-(-M // 2), SUB))
    if tm >= M:
        tm = M
    grid = (pl.cdiv(M, tm),)

    # bf16 matmul inputs (native MXU path), f32 biases / accumulation.
    x_b = x2d.astype(jnp.bfloat16)
    w1_b = w1.astype(jnp.bfloat16)
    w2_b = w2.astype(jnp.bfloat16)
    b1_2d = b1.reshape(1, D_h).astype(jnp.float32)
    b2_2d = b2.reshape(1, D_out).astype(jnp.float32)
    if d_out_p != D_out:
        # Zero-padded columns stay exactly 0 through bias-add + ReLU and are
        # sliced off after the kernel; only these small arrays are padded.
        w2_b = jnp.pad(w2_b, ((0, 0), (0, d_out_p - D_out)))
        b2_2d = jnp.pad(b2_2d, ((0, 0), (0, d_out_p - D_out)))

    flops = 2 * M * (D_in * D_h + D_h * d_out_p)
    bytes_accessed = (2 * (M * D_in + D_in * D_h + D_h * d_out_p)      # bf16
                      + 4 * (D_h + d_out_p)                            # biases
                      + jnp.dtype(out_dtype).itemsize * M * d_out_p)   # output

    def _call(buffered):
        return pl.pallas_call(
            _hypernet3_kernel,
            out_shape=jax.ShapeDtypeStruct((M, d_out_p), out_dtype),
            grid=grid,
            in_specs=[
                pl.BlockSpec((tm, D_in), lambda i: (i, 0)),   # x: streamed tiles
                _resident_spec((D_in, D_h), buffered),        # w1: VMEM-resident
                _resident_spec((1, D_h), buffered),           # b1
                _resident_spec((D_h, d_out_p), buffered),     # w2
                _resident_spec((1, d_out_p), buffered),       # b2
            ],
            out_specs=pl.BlockSpec((tm, d_out_p), lambda i: (i, 0)),
            compiler_params=pltpu.CompilerParams(
                dimension_semantics=("parallel",),
                # Conservative for v7x (64 MiB/TC); raise toward 96 MiB and
                # row_tile=1024 on v5e/v6e (128 MiB) for large hypernet heads.
                vmem_limit_bytes=48 * 1024 * 1024,
            ),
            cost_estimate=pl.CostEstimate(
                flops=flops, transcendentals=0,
                bytes_accessed=bytes_accessed),
        )(x_b, w1_b, b1_2d, w2_b, b2_2d)

    try:
        # Single-buffer the constant-index weights/biases (no need for the
        # default double buffering of blocks that never change).
        out = _call(pl.Buffered(1))
    except Exception:
        # pipeline_mode unsupported in this JAX build: fall back to defaults.
        out = _call(None)

    y = out if d_out_p == D_out else out[:, :D_out]
    # Matches .view(-1, x.shape[1], x.shape[2], main_input_dim, main_output_dim)
    return y.reshape(B, S1, S2, main_input_dim, main_output_dim)


def reference(x, w1, b1, w2, b2, main_input_dim, main_output_dim):
    h = jnp.maximum(x @ w1 + b1, 0.0)
    y = jnp.maximum(h @ w2 + b2, 0.0)
    B, S1, S2, _ = x.shape
    return y.reshape(B, S1, S2, main_input_dim, main_output_dim)


if __name__ == "__main__":
    key = jax.random.PRNGKey(0)
    k_x, k_w1, k_b1, k_w2, k_b2 = jax.random.split(key, 5)

    # Small shapes consistent with Hypernet3's 4-D input and hypernet output.
    batch, s1, s2 = 2, 4, 8
    input_dim, hidden_dim = 32, 48
    main_input_dim, main_output_dim = 4, 9
    output_dim = main_input_dim * main_output_dim  # 36

    x = jax.random.normal(k_x, (batch, s1, s2, input_dim), dtype=jnp.float32)
    # PyTorch Linear params, stored pre-transposed as (in, out).
    w1 = jax.random.normal(k_w1, (input_dim, hidden_dim), dtype=jnp.float32) * 0.1
    b1 = jax.random.normal(k_b1, (hidden_dim,), dtype=jnp.float32) * 0.1
    w2 = jax.random.normal(k_w2, (hidden_dim, output_dim), dtype=jnp.float32) * 0.1
    b2 = jax.random.normal(k_b2, (output_dim,), dtype=jnp.float32) * 0.1

    y = hypernet3_forward(x, w1, b1, w2, b2, main_input_dim, main_output_dim)
    y = jax.block_until_ready(y)

    # Kernel matmul inputs are bf16; compare against a reference that sees the
    # same bf16-rounded inputs (f32 math), with tolerance for the remaining
    # rounding / accumulation-order differences.
    x_r = x.astype(jnp.bfloat16).astype(jnp.float32)
    w1_r = w1.astype(jnp.bfloat16).astype(jnp.float32)
    w2_r = w2.astype(jnp.bfloat16).astype(jnp.float32)
    y_ref = reference(x_r, w1_r, b1, w2_r, b2, main_input_dim, main_output_dim)

    assert y.shape == (batch, s1, s2, main_input_dim, main_output_dim)
    assert jnp.allclose(y, y_ref, atol=2e-2, rtol=2e-2)

    print("KERNEL_OK")
</pallas_src>

<mosaic_0001>
module attributes {stable_mosaic.version = 11 : i64} {
  func.func @_hypernet3_kernel(%arg0: i32, %arg1: memref<32x32xbf16, #tpu.memory_space<vmem>>, %arg2: memref<32x48xbf16, #tpu.memory_space<vmem>>, %arg3: memref<1x48xf32, #tpu.memory_space<vmem>>, %arg4: memref<48x36xbf16, #tpu.memory_space<vmem>>, %arg5: memref<1x36xf32, #tpu.memory_space<vmem>>, %arg6: memref<32x36xf32, #tpu.memory_space<vmem>>) attributes {dimension_semantics = [#tpu.dimension_semantics<parallel>], iteration_bounds = array<i64: 2>, scalar_prefetch = 0 : i64, scratch_operands = 0 : i64, tpu.core_type = #tpu.core_type<tc>, window_params = [{transform_indices = @transform_0, window_bounds = array<i64: 32, 32>}, {pipeline_mode = #tpu.pipeline_mode<synchronous>, transform_indices = @transform_1, window_bounds = array<i64: 32, 48>}, {pipeline_mode = #tpu.pipeline_mode<synchronous>, transform_indices = @transform_2, window_bounds = array<i64: 1, 48>}, {pipeline_mode = #tpu.pipeline_mode<synchronous>, transform_indices = @transform_3, window_bounds = array<i64: 48, 36>}, {pipeline_mode = #tpu.pipeline_mode<synchronous>, transform_indices = @transform_4, window_bounds = array<i64: 1, 36>}, {transform_indices = @transform_5, window_bounds = array<i64: 32, 36>}]} {
    %c0 = arith.constant 0 : index
    %c0_0 = arith.constant 0 : index
    %0 = vector.load %arg1[%c0, %c0_0] : memref<32x32xbf16, #tpu.memory_space<vmem>>, vector<32x32xbf16>
    %c0_1 = arith.constant 0 : index
    %c0_2 = arith.constant 0 : index
    %1 = vector.load %arg2[%c0_1, %c0_2] : memref<32x48xbf16, #tpu.memory_space<vmem>>, vector<32x48xbf16>
    %cst = arith.constant dense<0.000000e+00> : vector<32x48xf32>
    %2 = tpu.matmul %0, %1, %cst {dimension_numbers = #tpu.dot_dimension_numbers<[1], [0], [0], [1], [0, 0, 1, 1], [], []>} : vector<32x32xbf16>, vector<32x48xbf16>, vector<32x48xf32> -> vector<32x48xf32>
    %c0_3 = arith.constant 0 : index
    %c0_4 = arith.constant 0 : index
    %3 = vector.load %arg3[%c0_3, %c0_4] : memref<1x48xf32, #tpu.memory_space<vmem>>, vector<1x48xf32>
    %4 = vector.broadcast %3 : vector<1x48xf32> to vector<32x48xf32>
    %5 = arith.addf %2, %4 : vector<32x48xf32>
    %cst_5 = arith.constant 0.000000e+00 : f32
    %6 = vector.broadcast %cst_5 : f32 to vector<32x48xf32>
    %7 = arith.maximumf %5, %6 : vector<32x48xf32>
    %8 = arith.truncf %7 : vector<32x48xf32> to vector<32x48xbf16>
    %c0_6 = arith.constant 0 : index
    %c0_7 = arith.constant 0 : index
    %9 = vector.load %arg4[%c0_6, %c0_7] : memref<48x36xbf16, #tpu.memory_space<vmem>>, vector<48x36xbf16>
    %cst_8 = arith.constant dense<0.000000e+00> : vector<32x36xf32>
    %10 = tpu.matmul %8, %9, %cst_8 {dimension_numbers = #tpu.dot_dimension_numbers<[1], [0], [0], [1], [0, 0, 1, 1], [], []>} : vector<32x48xbf16>, vector<48x36xbf16>, vector<32x36xf32> -> vector<32x36xf32>
    %c0_9 = arith.constant 0 : index
    %c0_10 = arith.constant 0 : index
    %11 = vector.load %arg5[%c0_9, %c0_10] : memref<1x36xf32, #tpu.memory_space<vmem>>, vector<1x36xf32>
    %12 = vector.broadcast %11 : vector<1x36xf32> to vector<32x36xf32>
    %13 = arith.addf %10, %12 : vector<32x36xf32>
    %cst_11 = arith.constant 0.000000e+00 : f32
    %14 = vector.broadcast %cst_11 : f32 to vector<32x36xf32>
    %15 = arith.maximumf %13, %14 : vector<32x36xf32>
    %c0_12 = arith.constant 0 : index
    %c0_13 = arith.constant 0 : index
    %16 = vector.load %arg6[%c0_12, %c0_13] : memref<32x36xf32, #tpu.memory_space<vmem>>, vector<32x36xf32>
    tpu.vector_store %arg6[%c0_12, %c0_13], %15 {strides = array<i32>} : memref<32x36xf32, #tpu.memory_space<vmem>>, vector<32x36xf32>,
    return
  }
  func.func @transform_0(%arg0: i32) -> (i32, i32) {
    %c0_i32 = arith.constant 0 : i32
    %c0_i32_0 = arith.constant 0 : i32
    return %arg0, %c0_i32 : i32, i32
  }
  func.func @transform_1(%arg0: i32) -> (i32, i32) {
    %c0_i32 = arith.constant 0 : i32
    %c0_i32_0 = arith.constant 0 : i32
    %c0_i32_1 = arith.constant 0 : i32
    return %c0_i32, %c0_i32_0 : i32, i32
  }
  func.func @transform_2(%arg0: i32) -> (i32, i32) {
    %c0_i32 = arith.constant 0 : i32
    %c0_i32_0 = arith.constant 0 : i32
    %c0_i32_1 = arith.constant 0 : i32
    return %c0_i32, %c0_i32_0 : i32, i32
  }
  func.func @transform_3(%arg0: i32) -> (i32, i32) {
    %c0_i32 = arith.constant 0 : i32
    %c0_i32_0 = arith.constant 0 : i32
    %c0_i32_1 = arith.constant 0 : i32
    return %c0_i32, %c0_i32_0 : i32, i32
  }
  func.func @transform_4(%arg0: i32) -> (i32, i32) {
    %c0_i32 = arith.constant 0 : i32
    %c0_i32_0 = arith.constant 0 : i32
    %c0_i32_1 = arith.constant 0 : i32
    return %c0_i32, %c0_i32_0 : i32, i32
  }
  func.func @transform_5(%arg0: i32) -> (i32, i32) {
    %c0_i32 = arith.constant 0 : i32
    %c0_i32_0 = arith.constant 0 : i32
    return %arg0, %c0_i32 : i32, i32
  }
}

module attributes {stable_mosaic.version = 11 : i64} {
  func.func @_hypernet3_kernel(%arg0: i32, %arg1: memref<32x32xbf16, #tpu.memory_space<vmem>>, %arg2: memref<32x48xbf16, #tpu.memory_space<vmem>>, %arg3: memref<1x48xf32, #tpu.memory_space<vmem>>, %arg4: memref<48x36xbf16, #tpu.memory_space<vmem>>, %arg5: memref<1x36xf32, #tpu.memory_space<vmem>>, %arg6: memref<32x36xf32, #tpu.memory_space<vmem>>) attributes {dimension_semantics = [#tpu.dimension_semantics<parallel>], iteration_bounds = array<i64: 2>, scalar_prefetch = 0 : i64, scratch_operands = 0 : i64, tpu.core_type = #tpu.core_type<tc>, window_params = [{transform_indices = @transform_0, window_bounds = array<i64: 32, 32>}, {pipeline_mode = #tpu.pipeline_mode<synchronous>, transform_indices = @transform_1, window_bounds = array<i64: 32, 48>}, {pipeline_mode = #tpu.pipeline_mode<synchronous>, transform_indices = @transform_2, window_bounds = array<i64: 1, 48>}, {pipeline_mode = #tpu.pipeline_mode<synchronous>, transform_indices = @transform_3, window_bounds = array<i64: 48, 36>}, {pipeline_mode = #tpu.pipeline_mode<synchronous>, transform_indices = @transform_4, window_bounds = array<i64: 1, 36>}, {transform_indices = @transform_5, window_bounds = array<i64: 32, 36>}]} {
    %c0 = arith.constant 0 : index
    %c0_0 = arith.constant 0 : index
    %0 = vector.load %arg1[%c0, %c0_0] : memref<32x32xbf16, #tpu.memory_space<vmem>>, vector<32x32xbf16>
    %c0_1 = arith.constant 0 : index
    %c0_2 = arith.constant 0 : index
    %1 = vector.load %arg2[%c0_1, %c0_2] : memref<32x48xbf16, #tpu.memory_space<vmem>>, vector<32x48xbf16>
    %cst = arith.constant dense<0.000000e+00> : vector<32x48xf32>
    %2 = tpu.matmul %0, %1, %cst {dimension_numbers = #tpu.dot_dimension_numbers<[1], [0], [0], [1], [0, 0, 1, 1], [], []>} : vector<32x32xbf16>, vector<32x48xbf16>, vector<32x48xf32> -> vector<32x48xf32>
    %c0_3 = arith.constant 0 : index
    %c0_4 = arith.constant 0 : index
    %3 = vector.load %arg3[%c0_3, %c0_4] : memref<1x48xf32, #tpu.memory_space<vmem>>, vector<1x48xf32>
    %4 = vector.broadcast %3 : vector<1x48xf32> to vector<32x48xf32>
    %5 = arith.addf %2, %4 : vector<32x48xf32>
    %cst_5 = arith.constant 0.000000e+00 : f32
    %6 = vector.broadcast %cst_5 : f32 to vector<32x48xf32>
    %7 = arith.maximumf %5, %6 : vector<32x48xf32>
    %8 = arith.truncf %7 : vector<32x48xf32> to vector<32x48xbf16>
    %c0_6 = arith.constant 0 : index
    %c0_7 = arith.constant 0 : index
    %9 = vector.load %arg4[%c0_6, %c0_7] : memref<48x36xbf16, #tpu.memory_space<vmem>>, vector<48x36xbf16>
    %cst_8 = arith.constant dense<0.000000e+00> : vector<32x36xf32>
    %10 = tpu.matmul %8, %9, %cst_8 {dimension_numbers = #tpu.dot_dimension_numbers<[1], [0], [0], [1], [0, 0, 1, 1], [], []>} : vector<32x48xbf16>, vector<48x36xbf16>, vector<32x36xf32> -> vector<32x36xf32>
    %c0_9 = arith.constant 0 : index
    %c0_10 = arith.constant 0 : index
    %11 = vector.load %arg5[%c0_9, %c0_10] : memref<1x36xf32, #tpu.memory_space<vmem>>, vector<1x36xf32>
    %12 = vector.broadcast %11 : vector<1x36xf32> to vector<32x36xf32>
    %13 = arith.addf %10, %12 : vector<32x36xf32>
    %cst_11 = arith.constant 0.000000e+00 : f32
    %14 = vector.broadcast %cst_11 : f32 to vector<32x36xf32>
    %15 = arith.maximumf %13, %14 : vector<32x36xf32>
    %c0_12 = arith.constant 0 : index
    %c0_13 = arith.constant 0 : index
    %16 = vector.load %arg6[%c0_12, %c0_13] : memref<32x36xf32, #tpu.memory_space<vmem>>, vector<32x36xf32>
    tpu.vector_store %arg6[%c0_12, %c0_13], %15 {strides = array<i32>} : memref<32x36xf32, #tpu.memory_space<vmem>>, vector<32x36xf32>,
    return
  }
  func.func @transform_0(%arg0: i32) -> (i32, i32) {
    %c0_i32 = arith.constant 0 : i32
    %c0_i32_0 = arith.constant 0 : i32
    return %arg0, %c0_i32 : i32, i32
  }
  func.func @transform_1(%arg0: i32) -> (i32, i32) {
    %c0_i32 = arith.constant 0 : i32
    %c0_i32_0 = arith.constant 0 : i32
    %c0_i32_1 = arith.constant 0 : i32
    return %c0_i32, %c0_i32_0 : i32, i32
  }
  func.func @transform_2(%arg0: i32) -> (i32, i32) {
    %c0_i32 = arith.constant 0 : i32
    %c0_i32_0 = arith.constant 0 : i32
    %c0_i32_1 = arith.constant 0 : i32
    return %c0_i32, %c0_i32_0 : i32, i32
  }
  func.func @transform_3(%arg0: i32) -> (i32, i32) {
    %c0_i32 = arith.constant 0 : i32
    %c0_i32_0 = arith.constant 0 : i32
    %c0_i32_1 = arith.constant 0 : i32
    return %c0_i32, %c0_i32_0 : i32, i32
  }
  func.func @transform_4(%arg0: i32) -> (i32, i32) {
    %c0_i32 = arith.constant 0 : i32
    %c0_i32_0 = arith.constant 0 : i32
    %c0_i32_1 = arith.constant 0 : i32
    return %c0_i32, %c0_i32_0 : i32, i32
  }
  func.func @transform_5(%arg0: i32) -> (i32, i32) {
    %c0_i32 = arith.constant 0 : i32
    %c0_i32_0 = arith.constant 0 : i32
    return %arg0, %c0_i32 : i32, i32
  }
}

</mosaic_0001>

<bundles_post_ra>
// kernel: tpu_custom_call.1
= control target key start
LH: loop header
LB: loop body
LE: loop exit
PB: predicated region body
PF: predicated region fallthrough
CT: control target
= control target key end

     0   :  { %s584_s18 = smov 0   ;;  %s626_s0 = inlined_call_operand.vmem [shape: bf16[64,32], index: 0, kind: input, shape index: {}]   ;;  %s627_s1 = inlined_call_operand.vmem [shape: bf16[32,48], index: 1, kind: input, shape index: {}]   ;;  %s628_s2 = inlined_call_operand.vmem [shape: f32[1,48], index: 2, kind: input, shape index: {}]   ;;  %s629_s3 = inlined_call_operand.vmem [shape: bf16[48,36], index: 3, kind: input, shape index: {}]   ;;  %s630_s4 = inlined_call_operand.vmem [shape: f32[1,36], index: 4, kind: input, shape index: {}]   ;;  %s631_s5 = inlined_call_operand.vmem [shape: f32[64,36], index: 5, kind: output, shape index: {}]  }
   0x1 LB: > { %s480_s19 = sadd.s32 4294967295, %s552_s18   ;;  %p484_p0 = scmp.ge.s32.totalorder %s552_s18, 1  ;;  %s552_s18 = sphi %s584_s18, %s15_s18  }
   0x2   : > { %p188_p1 = scmp.lt.s32.totalorder %s552_s18, 3 }
   0x4   : > { %p189_p2 = pnand %p484_p0, %p188_p1 }
   0x5   : > { %v539_v0 = vld [vmem:[%s627_s1] sm:$0xff] (!%p189_p2)   ;;  %s485_s22 = sshll.u32 (!%p189_p2), %s480_s19, 2  ;;  %v540_v1 = vld [vmem:[%s627_s1 + $0x8] sm:$0xff] (!%p189_p2)   ;;  %vm266_vm0 = vcmask (!%p189_p2), 261120   ;;  %v545_v6 = vld [vmem:[%s629_s3 + $0x10] sm:$0xff] (!%p189_p2)   ;;  %vm359_vm1 = vcmask (!%p189_p2), 392192  }
   0x6   : > { %192 = sbr.rel (%p189_p2) target bundleno = 460 (0x1cc), region = 40  ;;  %p217_p3 = scmp.lt.s32.totalorder (!%p189_p2), %s485_s22, 7  ;;  %513 = vmatprep.subr.bf16.mxu0 (!%p189_p2), %v539_v0  ;;  %v543_v2 = vld [vmem:[%s629_s3] sm:$0xff] (!%p189_p2)   ;;  %v544_v5 = vld [vmem:[%s629_s3 + $0x8] sm:$0xff] (!%p189_p2)   ;;  %vm419_vm2 = vcmask (!%p189_p2), 293888  }
   0x7   : > { %514 = vmatpush3.bf16.msra.mxu0 (!%p189_p2), %v539_v0  ;;  %521 = vmatprep.subr.bf16.mxu1 (!%p189_p2), %v543_v2  ;;  %v489_v7 = vld [vmem:[%s628_s2] ss:$0 sm:$0xff] (!%p189_p2) }
   0x8   : > { %515 = vmatprep.subr.bf16.mxu0 (!%p189_p2), %v540_v1  ;;  %522 = vmatpush3.bf16.msra.mxu1 (!%p189_p2), %v543_v2  ;;  %v496_v22 = vld [vmem:[%s630_s4] ss:$0 sm:$0xff] (!%p189_p2) }
   0x9   : > { %523 = vmatprep.subr.bf16.mxu1 (!%p189_p2), %v544_v5 }
   0xb   : > { %516 = vmatpush3.bf16.msra.mxu0 (!%p189_p2), %v540_v1 }
   0xc   : > { %524 = vmatpush3.bf16.msra.mxu1 (!%p189_p2), %v544_v5 }
   0xd   : > { %s633_s22 = smov (!%p217_p3, %s485_s22), 7  ;;  %525 = vmatprep.subr.bf16.mxu1 %v545_v6 }
   0xe   : > { %s486_s27 = sshll.u32 %s633_s22, 2  ;;  %s488_s14 = sshll.u32 %s633_s22, 3 }
   0xf   : > { %s220_s30 = scalar_lea.vmem %s626_s0, %s486_s27  ;;  %s226_s17 = scalar_lea.vmem %s631_s5, %s488_s14 }
  0x10   : > { %v541_v3 = vld [vmem:[%s220_s30] sm:$0xff]   ;;  %v542_v4 = vld [vmem:[%s220_s30 + $0x8] sm:$0xff]   ;;  %526 = vmatpush3.bf16.msra.mxu1 %v545_v6 }
  0x11   : > { %517 = vmatprep.mubr.msk.bf16.mxu0 %vm266_vm0, %v541_v3 }
  0x12   : > { %518 = vmatmul.mubr.msk.bf16.vlgmr.msra.gmra.mrb[0].mxu0 %vm266_vm0, %v542_v4 }
  0xe5   : > { %v519_v8 = vpop.f32.mrb[0].mxu0 }
  0xe6   : > { %v316_v9 = vadd.f32 %v519_v8, %v489_v7  ;;  %v307_v10 = vpop.f32.mrb[1].mxu0 }
  0xe7   : > { %v308_v11 = vadd.f32 %v489_v7, %v307_v10  ;;  %v520_v12 = vpop.f32.mrb[2].mxu0 }
  0xe8   : > { %v319_v13 = vadd.f32 %v520_v12, %v489_v7  ;;  %v310_v14 = vpop.f32.mrb[3].mxu0  ;;  %v324_v16 = vmax.f32 %v316_v9, 0.0 }
  0xe9   : > { %v311_v15 = vadd.f32 %v489_v7, %v310_v14  ;;  %v322_v18 = vmax.f32 %v308_v11, 0.0 }
  0xea   : > { %v325_v17 = vmax.f32 %v319_v13, 0.0 }
  0xeb   : > { %v323_v19 = vmax.f32 %v311_v15, 0.0 }
  0xec   : > { %v327_v20 = vpack.c.bf16 %v325_v17, %v324_v16 }
  0xed   : > { %v326_v21 = vpack.c.bf16 %v323_v19, %v322_v18 }
  0xef   : > { %527 = vmatprep.mubr.msk.bf16.mxu1 %vm359_vm1, %v326_v21 }
  0xf0   : > { %528 = vmatmul.mubr.msk.bf16.vlgmr.msra.gmra.mrb[0].mxu1 %vm359_vm1, %v327_v20 }
 0x1c3   : > { %v529_v23 = vpop.f32.mrb[0].mxu1 }
 0x1c4   : > { %v400_v24 = vpop.f32.mrb[1].mxu1  ;;  %v409_v27 = vadd.f32 %v529_v23, %v496_v22 }
 0x1c5   : > { %v401_v25 = vadd.f32 %v496_v22, %v400_v24  ;;  %v530_v26 = vpop.f32.mrb[2].mxu1 }
 0x1c6   : > { %v403_v28 = vpop.f32.mrb[3].mxu1  ;;  %v412_v30 = vadd.f32 %v530_v26, %v496_v22  ;;  %v417_v33 = vmax.f32 %v409_v27, 0.0 }
 0x1c7   : > { %v415_v29 = vmax.f32 %v401_v25, 0.0  ;;  %v404_v31 = vadd.f32 %v496_v22, %v403_v28 }
 0x1c8   : > { %v418_v34 = vmax.f32 %v412_v30, 0.0  ;;  %422 = vst.msk [vmem:[%s226_s17 + $0x10] sm:$0xff] %vm419_vm2, %v417_v33 }
 0x1c9   : > { %420 = vst.msk [vmem:[%s226_s17] sm:$0xff] %vm419_vm2, %v415_v29  ;;  %v416_v32 = vmax.f32 %v404_v31, 0.0 }
 0x1ca   : > { %423 = vst.msk [vmem:[%s226_s17 + $0x18] sm:$0xff] %vm419_vm2, %v418_v34 }
 0x1cb   : > { %421 = vst.msk [vmem:[%s226_s17 + $0x8] sm:$0xff] %vm419_vm2, %v416_v32 }
 0x1cc PF: > { %s15_s18 = sadd.s32 1, %s552_s18  }
 0x1cd   : > { %p12_p4 = scmp.ge.s32.totalorder %s15_s18, 4  }
 0x1cf   :  { %14 = sbr.rel (!%p12_p4) target bundleno = 1 (0x1), region = 70 }

// kernel: tpu_custom_call.1
= control target key start
LH: loop header
LB: loop body
LE: loop exit
PB: predicated region body
PF: predicated region fallthrough
CT: control target
= control target key end

     0   :  { %s584_s18 = smov 0   ;;  %s626_s0 = inlined_call_operand.vmem [shape: bf16[64,32], index: 0, kind: input, shape index: {}]   ;;  %s627_s1 = inlined_call_operand.vmem [shape: bf16[32,48], index: 1, kind: input, shape index: {}]   ;;  %s628_s2 = inlined_call_operand.vmem [shape: f32[1,48], index: 2, kind: input, shape index: {}]   ;;  %s629_s3 = inlined_call_operand.vmem [shape: bf16[48,36], index: 3, kind: input, shape index: {}]   ;;  %s630_s4 = inlined_call_operand.vmem [shape: f32[1,36], index: 4, kind: input, shape index: {}]   ;;  %s631_s5 = inlined_call_operand.vmem [shape: f32[64,36], index: 5, kind: output, shape index: {}]  }
   0x1 LB: > { %s480_s19 = sadd.s32 4294967295, %s552_s18   ;;  %p484_p0 = scmp.ge.s32.totalorder %s552_s18, 1  ;;  %s552_s18 = sphi %s584_s18, %s15_s18  }
   0x2   : > { %p188_p1 = scmp.lt.s32.totalorder %s552_s18, 3 }
   0x4   : > { %p189_p2 = pnand %p484_p0, %p188_p1 }
   0x5   : > { %v539_v0 = vld [vmem:[%s627_s1] sm:$0xff] (!%p189_p2)   ;;  %s485_s22 = sshll.u32 (!%p189_p2), %s480_s19, 2  ;;  %v540_v1 = vld [vmem:[%s627_s1 + $0x8] sm:$0xff] (!%p189_p2)   ;;  %vm266_vm0 = vcmask (!%p189_p2), 261120   ;;  %v545_v6 = vld [vmem:[%s629_s3 + $0x10] sm:$0xff] (!%p189_p2)   ;;  %vm359_vm1 = vcmask (!%p189_p2), 392192  }
   0x6   : > { %192 = sbr.rel (%p189_p2) target bundleno = 460 (0x1cc), region = 40  ;;  %p217_p3 = scmp.lt.s32.totalorder (!%p189_p2), %s485_s22, 7  ;;  %513 = vmatprep.subr.bf16.mxu0 (!%p189_p2), %v539_v0  ;;  %v543_v2 = vld [vmem:[%s629_s3] sm:$0xff] (!%p189_p2)   ;;  %v544_v5 = vld [vmem:[%s629_s3 + $0x8] sm:$0xff] (!%p189_p2)   ;;  %vm419_vm2 = vcmask (!%p189_p2), 293888  }
   0x7   : > { %514 = vmatpush3.bf16.msra.mxu0 (!%p189_p2), %v539_v0  ;;  %521 = vmatprep.subr.bf16.mxu1 (!%p189_p2), %v543_v2  ;;  %v489_v7 = vld [vmem:[%s628_s2] ss:$0 sm:$0xff] (!%p189_p2) }
   0x8   : > { %515 = vmatprep.subr.bf16.mxu0 (!%p189_p2), %v540_v1  ;;  %522 = vmatpush3.bf16.msra.mxu1 (!%p189_p2), %v543_v2  ;;  %v496_v22 = vld [vmem:[%s630_s4] ss:$0 sm:$0xff] (!%p189_p2) }
   0x9   : > { %523 = vmatprep.subr.bf16.mxu1 (!%p189_p2), %v544_v5 }
   0xb   : > { %516 = vmatpush3.bf16.msra.mxu0 (!%p189_p2), %v540_v1 }
   0xc   : > { %524 = vmatpush3.bf16.msra.mxu1 (!%p189_p2), %v544_v5 }
   0xd   : > { %s633_s22 = smov (!%p217_p3, %s485_s22), 7  ;;  %525 = vmatprep.subr.bf16.mxu1 %v545_v6 }
   0xe   : > { %s486_s27 = sshll.u32 %s633_s22, 2  ;;  %s488_s14 = sshll.u32 %s633_s22, 3 }
   0xf   : > { %s220_s30 = scalar_lea.vmem %s626_s0, %s486_s27  ;;  %s226_s17 = scalar_lea.vmem %s631_s5, %s488_s14 }
  0x10   : > { %v541_v3 = vld [vmem:[%s220_s30] sm:$0xff]   ;;  %v542_v4 = vld [vmem:[%s220_s30 + $0x8] sm:$0xff]   ;;  %526 = vmatpush3.bf16.msra.mxu1 %v545_v6 }
  0x11   : > { %517 = vmatprep.mubr.msk.bf16.mxu0 %vm266_vm0, %v541_v3 }
  0x12   : > { %518 = vmatmul.mubr.msk.bf16.vlgmr.msra.gmra.mrb[0].mxu0 %vm266_vm0, %v542_v4 }
  0xe5   : > { %v519_v8 = vpop.f32.mrb[0].mxu0 }
  0xe6   : > { %v316_v9 = vadd.f32 %v519_v8, %v489_v7  ;;  %v307_v10 = vpop.f32.mrb[1].mxu0 }
  0xe7   : > { %v308_v11 = vadd.f32 %v489_v7, %v307_v10  ;;  %v520_v12 = vpop.f32.mrb[2].mxu0 }
  0xe8   : > { %v319_v13 = vadd.f32 %v520_v12, %v489_v7  ;;  %v310_v14 = vpop.f32.mrb[3].mxu0  ;;  %v324_v16 = vmax.f32 %v316_v9, 0.0 }
  0xe9   : > { %v311_v15 = vadd.f32 %v489_v7, %v310_v14  ;;  %v322_v18 = vmax.f32 %v308_v11, 0.0 }
  0xea   : > { %v325_v17 = vmax.f32 %v319_v13, 0.0 }
  0xeb   : > { %v323_v19 = vmax.f32 %v311_v15, 0.0 }
  0xec   : > { %v327_v20 = vpack.c.bf16 %v325_v17, %v324_v16 }
  0xed   : > { %v326_v21 = vpack.c.bf16 %v323_v19, %v322_v18 }
  0xef   : > { %527 = vmatprep.mubr.msk.bf16.mxu1 %vm359_vm1, %v326_v21 }
  0xf0   : > { %528 = vmatmul.mubr.msk.bf16.vlgmr.msra.gmra.mrb[0].mxu1 %vm359_vm1, %v327_v20 }
 0x1c3   : > { %v529_v23 = vpop.f32.mrb[0].mxu1 }
 0x1c4   : > { %v400_v24 = vpop.f32.mrb[1].mxu1  ;;  %v409_v27 = vadd.f32 %v529_v23, %v496_v22 }
 0x1c5   : > { %v401_v25 = vadd.f32 %v496_v22, %v400_v24  ;;  %v530_v26 = vpop.f32.mrb[2].mxu1 }
 0x1c6   : > { %v403_v28 = vpop.f32.mrb[3].mxu1  ;;  %v412_v30 = vadd.f32 %v530_v26, %v496_v22  ;;  %v417_v33 = vmax.f32 %v409_v27, 0.0 }
 0x1c7   : > { %v415_v29 = vmax.f32 %v401_v25, 0.0  ;;  %v404_v31 = vadd.f32 %v496_v22, %v403_v28 }
 0x1c8   : > { %v418_v34 = vmax.f32 %v412_v30, 0.0  ;;  %422 = vst.msk [vmem:[%s226_s17 + $0x10] sm:$0xff] %vm419_vm2, %v417_v33 }
 0x1c9   : > { %420 = vst.msk [vmem:[%s226_s17] sm:$0xff] %vm419_vm2, %v415_v29  ;;  %v416_v32 = vmax.f32 %v404_v31, 0.0 }
 0x1ca   : > { %423 = vst.msk [vmem:[%s226_s17 + $0x18] sm:$0xff] %vm419_vm2, %v418_v34 }
 0x1cb   : > { %421 = vst.msk [vmem:[%s226_s17 + $0x8] sm:$0xff] %vm419_vm2, %v416_v32 }
 0x1cc PF: > { %s15_s18 = sadd.s32 1, %s552_s18  }
 0x1cd   : > { %p12_p4 = scmp.ge.s32.totalorder %s15_s18, 4  }
 0x1cf   :  { %14 = sbr.rel (!%p12_p4) target bundleno = 1 (0x1), region = 70 }

</bundles_post_ra>
